<compile_context>
chip_gen: v5e
topology: v5e:2x2
jax: 0.10.0
libtpu: 0.0.40
codegen_flags: <defaults>
</compile_context>

<pallas_src>
import jax
import jax.numpy as jnp
from jax.experimental import pallas as pl
from jax.experimental.pallas import tpu as pltpu


def _fused_checksum_kernel(x0_ref, x1_ref, x2_ref, x3_ref,
                           s0_ref, s1_ref, s2_ref, s3_ref):
    # Read-only touch: one cross-lane reduction per tensor, no writeback of
    # the input data (only four scalars are stored).
    s0_ref[...] = jnp.sum(x0_ref[...].astype(jnp.float32)).reshape(1, 1)
    s1_ref[...] = jnp.sum(x1_ref[...].astype(jnp.float32)).reshape(1, 1)
    s2_ref[...] = jnp.sum(x2_ref[...].astype(jnp.float32)).reshape(1, 1)
    s3_ref[...] = jnp.sum(x3_ref[...].astype(jnp.float32)).reshape(1, 1)


def fused_checksum_touch(masked_pred_X, masked_pred_E, true_X, true_E):
    """Optional device-side touch: one fused, read-only pallas_call.

    Returns a tuple of four (1, 1) float32 checksums (sum of each tensor).
    Not used by forward(); kept for validation / if a genuine device touch is
    ever required.  The outputs are consumed by the caller, so no
    has_side_effects flag is needed to survive DCE under jit.
    """
    inputs = (masked_pred_X, masked_pred_E, true_X, true_E)

    in_bytes = sum(int(x.size) * x.dtype.itemsize for x in inputs)
    out_bytes = 4 * 1 * 1 * 4
    flops = sum(int(x.size) for x in inputs)  # one add per element (approx.)

    sums = pl.pallas_call(
        _fused_checksum_kernel,
        out_shape=tuple(
            jax.ShapeDtypeStruct((1, 1), jnp.float32) for _ in inputs
        ),
        # Whole-array blocks (no grid): full-extent blocks are exempt from the
        # (8,128) divisibility rule, so no wrapper-side padding is needed.
        in_specs=[pl.BlockSpec(memory_space=pltpu.MemorySpace.VMEM)] * 4,
        out_specs=tuple(
            pl.BlockSpec(memory_space=pltpu.MemorySpace.VMEM) for _ in inputs
        ),
        cost_estimate=pl.CostEstimate(
            flops=flops, transcendentals=0,
            bytes_accessed=in_bytes + out_bytes),
    )(*inputs)

    return sums


class TrainAbstractMetricsDiscrete:
    """JAX/Pallas port of digress.metrics.abstract_metrics.TrainAbstractMetricsDiscrete."""

    def __init__(self):
        # Reference module defines no parameters / buffers.
        pass

    def forward(self, masked_pred_X, masked_pred_E, true_X, true_E, log: bool):
        # Reference forward() is `pass` -> pure no-op: dispatch zero device
        # work and return None.
        return None

    def __call__(self, *args, **kwargs):
        return self.forward(*args, **kwargs)

    def reset(self):
        pass

    def log_epoch_metrics(self):
        return (None, None)


if __name__ == "__main__":
    key = jax.random.PRNGKey(0)
    k1, k2, k3, k4 = jax.random.split(key, 4)

    bs, n, dx, de = 2, 8, 16, 8
    masked_pred_X = jax.random.normal(k1, (bs, n, dx), dtype=jnp.float32)
    masked_pred_E = jax.random.normal(k2, (bs, n, n, de), dtype=jnp.float32)
    true_X = jax.random.normal(k3, (bs, n, dx), dtype=jnp.float32)
    true_E = jax.random.normal(k4, (bs, n, n, de), dtype=jnp.float32)

    module = TrainAbstractMetricsDiscrete()

    # Exercise the fused read-only Pallas kernel once to verify lowering /
    # execution on TPU.
    sums = fused_checksum_touch(masked_pred_X, masked_pred_E, true_X, true_E)
    for s in sums:
        jax.block_until_ready(s)

    # Sanity: checksums match a pure-JAX reference (reduction-order tolerance).
    refs = (masked_pred_X, masked_pred_E, true_X, true_E)
    for s, r in zip(sums, refs):
        assert s.shape == (1, 1)
        assert jnp.allclose(s[0, 0], jnp.sum(r), rtol=1e-5, atol=1e-4)

    # Forward matches the reference semantics: no device work, returns None.
    result = module(masked_pred_X, masked_pred_E, true_X, true_E, log=True)
    assert result is None
    assert module.log_epoch_metrics() == (None, None)

    print("KERNEL_OK")
</pallas_src>

<mosaic_0001>
module attributes {stable_mosaic.version = 11 : i64} {
  func.func @_fused_checksum_kernel(%arg0: memref<2x8x16xf32, #tpu.memory_space<vmem>>, %arg1: memref<2x8x8x8xf32, #tpu.memory_space<vmem>>, %arg2: memref<2x8x16xf32, #tpu.memory_space<vmem>>, %arg3: memref<2x8x8x8xf32, #tpu.memory_space<vmem>>, %arg4: memref<1x1xf32, #tpu.memory_space<vmem>>, %arg5: memref<1x1xf32, #tpu.memory_space<vmem>>, %arg6: memref<1x1xf32, #tpu.memory_space<vmem>>, %arg7: memref<1x1xf32, #tpu.memory_space<vmem>>) attributes {dimension_semantics = [], scalar_prefetch = 0 : i64, scratch_operands = 0 : i64, tpu.core_type = #tpu.core_type<tc>} {
    %c0 = arith.constant 0 : index
    %c0_0 = arith.constant 0 : index
    %c0_1 = arith.constant 0 : index
    %0 = vector.load %arg0[%c0, %c0_0, %c0_1] : memref<2x8x16xf32, #tpu.memory_space<vmem>>, vector<2x8x16xf32>
    %1 = vector.shape_cast %0 : vector<2x8x16xf32> to vector<1x2x8x16xf32>
    %cst = arith.constant dense<0.000000e+00> : vector<1xf32>
    %2 = vector.multi_reduction <add>, %1, %cst [1, 2, 3] : vector<1x2x8x16xf32> to vector<1xf32>
    %3 = vector.shape_cast %2 : vector<1xf32> to vector<1x1x1x1xf32>
    %4 = vector.extract %3[0, 0, 0, 0] : f32 from vector<1x1x1x1xf32>
    %5 = vector.broadcast %4 : f32 to vector<1x1xf32>
    %c0_2 = arith.constant 0 : index
    %c0_3 = arith.constant 0 : index
    %6 = vector.load %arg4[%c0_2, %c0_3] : memref<1x1xf32, #tpu.memory_space<vmem>>, vector<1x1xf32>
    tpu.vector_store %arg4[%c0_2, %c0_3], %5 {strides = array<i32>} : memref<1x1xf32, #tpu.memory_space<vmem>>, vector<1x1xf32>,
    %c0_4 = arith.constant 0 : index
    %c0_5 = arith.constant 0 : index
    %c0_6 = arith.constant 0 : index
    %c0_7 = arith.constant 0 : index
    %7 = vector.load %arg1[%c0_4, %c0_5, %c0_6, %c0_7] : memref<2x8x8x8xf32, #tpu.memory_space<vmem>>, vector<2x8x8x8xf32>
    %8 = vector.shape_cast %7 : vector<2x8x8x8xf32> to vector<1x2x8x8x8xf32>
    %cst_8 = arith.constant dense<0.000000e+00> : vector<1xf32>
    %9 = vector.multi_reduction <add>, %8, %cst_8 [1, 2, 3, 4] : vector<1x2x8x8x8xf32> to vector<1xf32>
    %10 = vector.shape_cast %9 : vector<1xf32> to vector<1x1x1x1x1xf32>
    %11 = vector.extract %10[0, 0, 0, 0, 0] : f32 from vector<1x1x1x1x1xf32>
    %12 = vector.broadcast %11 : f32 to vector<1x1xf32>
    %c0_9 = arith.constant 0 : index
    %c0_10 = arith.constant 0 : index
    %13 = vector.load %arg5[%c0_9, %c0_10] : memref<1x1xf32, #tpu.memory_space<vmem>>, vector<1x1xf32>
    tpu.vector_store %arg5[%c0_9, %c0_10], %12 {strides = array<i32>} : memref<1x1xf32, #tpu.memory_space<vmem>>, vector<1x1xf32>,
    %c0_11 = arith.constant 0 : index
    %c0_12 = arith.constant 0 : index
    %c0_13 = arith.constant 0 : index
    %14 = vector.load %arg2[%c0_11, %c0_12, %c0_13] : memref<2x8x16xf32, #tpu.memory_space<vmem>>, vector<2x8x16xf32>
    %15 = vector.shape_cast %14 : vector<2x8x16xf32> to vector<1x2x8x16xf32>
    %cst_14 = arith.constant dense<0.000000e+00> : vector<1xf32>
    %16 = vector.multi_reduction <add>, %15, %cst_14 [1, 2, 3] : vector<1x2x8x16xf32> to vector<1xf32>
    %17 = vector.shape_cast %16 : vector<1xf32> to vector<1x1x1x1xf32>
    %18 = vector.extract %17[0, 0, 0, 0] : f32 from vector<1x1x1x1xf32>
    %19 = vector.broadcast %18 : f32 to vector<1x1xf32>
    %c0_15 = arith.constant 0 : index
    %c0_16 = arith.constant 0 : index
    %20 = vector.load %arg6[%c0_15, %c0_16] : memref<1x1xf32, #tpu.memory_space<vmem>>, vector<1x1xf32>
    tpu.vector_store %arg6[%c0_15, %c0_16], %19 {strides = array<i32>} : memref<1x1xf32, #tpu.memory_space<vmem>>, vector<1x1xf32>,
    %c0_17 = arith.constant 0 : index
    %c0_18 = arith.constant 0 : index
    %c0_19 = arith.constant 0 : index
    %c0_20 = arith.constant 0 : index
    %21 = vector.load %arg3[%c0_17, %c0_18, %c0_19, %c0_20] : memref<2x8x8x8xf32, #tpu.memory_space<vmem>>, vector<2x8x8x8xf32>
    %22 = vector.shape_cast %21 : vector<2x8x8x8xf32> to vector<1x2x8x8x8xf32>
    %cst_21 = arith.constant dense<0.000000e+00> : vector<1xf32>
    %23 = vector.multi_reduction <add>, %22, %cst_21 [1, 2, 3, 4] : vector<1x2x8x8x8xf32> to vector<1xf32>
    %24 = vector.shape_cast %23 : vector<1xf32> to vector<1x1x1x1x1xf32>
    %25 = vector.extract %24[0, 0, 0, 0, 0] : f32 from vector<1x1x1x1x1xf32>
    %26 = vector.broadcast %25 : f32 to vector<1x1xf32>
    %c0_22 = arith.constant 0 : index
    %c0_23 = arith.constant 0 : index
    %27 = vector.load %arg7[%c0_22, %c0_23] : memref<1x1xf32, #tpu.memory_space<vmem>>, vector<1x1xf32>
    tpu.vector_store %arg7[%c0_22, %c0_23], %26 {strides = array<i32>} : memref<1x1xf32, #tpu.memory_space<vmem>>, vector<1x1xf32>,
    return
  }
}

</mosaic_0001>

<bundles_post_ra>
// kernel: tpu_custom_call.1
= control target key start
LH: loop header
LB: loop body
LE: loop exit
PB: predicated region body
PF: predicated region fallthrough
CT: control target
= control target key end

     0   :  { %13 = vsyncpa [#allocation3], 0  ;;  %s636_s0 = inlined_call_operand.hbm [shape: f32[2,8,16], index: 0, kind: input, shape index: {}]   ;;  %s637_s1 = inlined_call_operand.hbm [shape: f32[2,8,8,8], index: 1, kind: input, shape index: {}]   ;;  %s638_s2 = inlined_call_operand.hbm [shape: f32[2,8,16], index: 2, kind: input, shape index: {}]   ;;  %s639_s3 = inlined_call_operand.hbm [shape: f32[2,8,8,8], index: 3, kind: input, shape index: {}]   ;;  %s640_s4 = inlined_call_operand.hbm [shape: f32[1,1], index: 4, kind: output, shape index: {0}]   ;;  %s641_s5 = inlined_call_operand.hbm [shape: f32[1,1], index: 5, kind: output, shape index: {1}]   ;;  %s642_s6 = inlined_call_operand.hbm [shape: f32[1,1], index: 6, kind: output, shape index: {2}]   ;;  %s643_s7 = inlined_call_operand.hbm [shape: f32[1,1], index: 7, kind: output, shape index: {3}]  }
   0x1   :  { %14 = vsyncpa [#allocation6], 0 }
   0x2   :  { %15 = vsyncpa [#allocation9], 0 }
   0x3   :  { %16 = vsyncpa [#allocation4], 0 }
   0x4   :  { %17 = vsyncpa [#allocation12], 0 }
   0x5   :  { %18 = vsyncpa [#allocation15], 0  ;;  %s36_s26 = sshll.u32 %s637_s1, 4  ;;  %s526_s27 = smov [#allocation5]   ;;  %s37_s26 = int_to_ptr.hbm [resolvable:$true] %s36_s26 }
   0x6   :  { %s38_s28 = sshll.u32 %s526_s27, 4  ;;  %s23_s8 = sshll.u32 %s636_s0, 4  ;;  %s39_s28 = int_to_ptr.vmem [resolvable:$true] %s38_s28  ;;  %s24_s8 = int_to_ptr.hbm [resolvable:$true] %s23_s8 }
   0x7   :  { %s527_s9 = smov 128   ;;  %s528_s10 = smov 8  }
   0x8   :  { %44 = dma.hbm_to_vmem [thread:$0]  %s37_s26, 2048, %s39_s28, [#allocation6], %s527_s9, %s527_s9, %s528_s10  }
   0x9   :  { %s529_s11 = smov [#allocation2]   ;;  %s49_s15 = sshll.u32 %s638_s2, 4  ;;  %s50_s15 = int_to_ptr.hbm [resolvable:$true] %s49_s15 }
   0xa   :  { %s25_s12 = sshll.u32 %s529_s11, 4  ;;  %s62_s17 = sshll.u32 %s639_s3, 4  ;;  %s26_s12 = int_to_ptr.vmem [resolvable:$true] %s25_s12  ;;  %s63_s17 = int_to_ptr.hbm [resolvable:$true] %s62_s17 }
   0xb   :  { %31 = dma.hbm_to_vmem [thread:$0]  %s24_s8, 256, %s26_s12, [#allocation3], %s527_s9, %s527_s9, %s528_s10  }
   0xc   :  { %s530_s18 = smov [#allocation7]   ;;  %s531_s0 = smov [#allocation8]  }
   0xd   :  { %s51_s19 = sshll.u32 %s530_s18, 4  ;;  %s64_s20 = sshll.u32 %s531_s0, 4  ;;  %s52_s19 = int_to_ptr.vmem [resolvable:$true] %s51_s19  ;;  %s65_s20 = int_to_ptr.vmem [resolvable:$true] %s64_s20 }
   0xe   :  { %57 = dma.hbm_to_vmem [thread:$0]  %s50_s15, 256, %s52_s19, [#allocation6], %s527_s9, %s527_s9, %s528_s10  }
   0xf   :  { %70 = dma.hbm_to_vmem [thread:$0]  %s63_s17, 2048, %s65_s20, [#allocation9], %s527_s9, %s527_s9, %s528_s10  }
  0x10   :  { %514 = dma.done.wait [#allocation3], 256  }
  0x11   :  { %515 = vsyncadd [#allocation3], 4294967040 }
  0x12   :  { %516 = dma.done.wait [#allocation6], 2304  }
  0x13   :  { %517 = vsyncadd [#allocation6], 4294964992 }
  0x14   :  { %518 = dma.done.wait [#allocation9], 2048  }
  0x15   :  { %519 = vsyncadd [#allocation9], 4294965248  ;;  %vm89_vm0 = vcmask 130048   ;;  %vm121_vm1 = vcmask 64512   ;;  %v87_v0 = vld [vmem:[#allocation2] sm:$0xff]  ;;  %v88_v1 = vld [vmem:[#allocation2 + $0x8] sm:$0xff] }
  0x16   :  { %v164_v2 = vld [vmem:[#allocation7] sm:$0xff]  ;;  %v90_v3 = vsel %vm89_vm0, %v87_v0, 0.0  ;;  %v91_v4 = vsel %vm89_vm0, %v88_v1, 0.0  ;;  %v165_v5 = vld [vmem:[#allocation7 + $0x8] sm:$0xff]  ;;  %v180_v7 = vld [vmem:[#allocation8] sm:$0xff]  ;;  %s245_s21 = sshll.u32 %s640_s4, 4  ;;  %s246_s21 = int_to_ptr.hbm [resolvable:$true] %s245_s21 }
  0x17   :  { %v166_v6 = vsel %vm89_vm0, %v164_v2, 0.0  ;;  %v181_v8 = vld [vmem:[#allocation8 + $0x8] sm:$0xff]  ;;  %v92_v9 = vadd.f32 %v91_v4, %v90_v3  ;;  %v167_v10 = vsel %vm89_vm0, %v165_v5, 0.0  ;;  %v182_v11 = vld [vmem:[#allocation8 + $0x10] sm:$0xff]  ;;  %v183_v12 = vld [vmem:[#allocation8 + $0x18] sm:$0xff]  ;;  %v196_v13 = vsel %vm121_vm1, %v180_v7, 0.0 }
  0x18   :  { %v197_v14 = vsel %vm121_vm1, %v181_v8, 0.0  ;;  %v168_v15 = vadd.f32 %v167_v10, %v166_v6  ;;  %v184_v16 = vld [vmem:[#allocation8 + $0x20] sm:$0xff]  ;;  %v199_v18 = vsel %vm121_vm1, %v182_v11, 0.0  ;;  %v201_v19 = vsel %vm121_vm1, %v183_v12, 0.0  ;;  %v185_v20 = vld [vmem:[#allocation8 + $0x28] sm:$0xff]  ;;  %v186_v22 = vld [vmem:[#allocation8 + $0x30] sm:$0xff] }
  0x19   :  { %v198_v17 = vadd.f32 %v197_v14, %v196_v13  ;;  %93 = vadd.xlane.f32.xlu0 %v92_v9  ;;  %v203_v23 = vsel %vm121_vm1, %v184_v16, 0.0  ;;  %v105_v25 = vld [vmem:[#allocation5] sm:$0xff]  ;;  %v106_v26 = vld [vmem:[#allocation5 + $0x8] sm:$0xff]  ;;  %v107_v27 = vld [vmem:[#allocation5 + $0x10] sm:$0xff]  ;;  %v205_v28 = vsel %vm121_vm1, %v185_v20, 0.0  ;;  %v207_v37 = vsel %vm121_vm1, %v186_v22, 0.0 }
  0x1a   :  { %169 = vadd.xlane.f32.xlu1 %v168_v15  ;;  %v108_v29 = vld [vmem:[#allocation5 + $0x18] sm:$0xff]  ;;  %v122_v30 = vsel %vm121_vm1, %v105_v25, 0.0  ;;  %v123_v31 = vsel %vm121_vm1, %v106_v26, 0.0  ;;  %v125_v32 = vsel %vm121_vm1, %v107_v27, 0.0  ;;  %v187_v33 = vld [vmem:[#allocation8 + $0x38] sm:$0xff]  ;;  %v109_v35 = vld [vmem:[#allocation5 + $0x20] sm:$0xff] }
  0x1b   :  { %v200_v21 = vadd.f32 %v199_v18, %v198_v17  ;;  %v124_v36 = vadd.f32 %v123_v31, %v122_v30  ;;  %v127_v38 = vsel %vm121_vm1, %v108_v29, 0.0  ;;  %v188_v39 = vld [vmem:[#allocation8 + $0x40] sm:$0xff]  ;;  %v110_v41 = vld [vmem:[#allocation5 + $0x28] sm:$0xff]  ;;  %v209_v43 = vsel %vm121_vm1, %v187_v33, 0.0  ;;  %v189_v45 = vld [vmem:[#allocation8 + $0x48] sm:$0xff]  ;;  %s532_s22 = smov [#allocation10]  }
  0x1c   :  { %v129_v44 = vsel %vm121_vm1, %v109_v35, 0.0  ;;  %v111_v47 = vld [vmem:[#allocation5 + $0x30] sm:$0xff]  ;;  %v211_v49 = vsel %vm121_vm1, %v188_v39, 0.0  ;;  %v131_v50 = vsel %vm121_vm1, %v110_v41, 0.0  ;;  %v190_v51 = vld [vmem:[#allocation8 + $0x50] sm:$0xff]  ;;  %v112_v53 = vld [vmem:[#allocation5 + $0x38] sm:$0xff] }
  0x1d   :  { %v202_v24 = vadd.f32 %v201_v19, %v200_v21  ;;  %v126_v42 = vadd.f32 %v125_v32, %v124_v36  ;;  %v213_v55 = vsel %vm121_vm1, %v189_v45, 0.0  ;;  %v133_v56 = vsel %vm121_vm1, %v111_v47, 0.0  ;;  %v191_v57 = vld [vmem:[#allocation8 + $0x58] sm:$0xff]  ;;  %v113_v59 = vld [vmem:[#allocation5 + $0x40] sm:$0xff]  ;;  %v192_v63 = vld [vmem:[#allocation8 + $0x60] sm:$0xff]  ;;  %s243_s23 = sshll.u32 %s532_s22, 4  ;;  %s244_s23 = int_to_ptr.vmem [resolvable:$true] %s243_s23 }
  0x1e   :  { %v215_v61 = vsel %vm121_vm1, %v190_v51, 0.0  ;;  %v135_v62 = vsel %vm121_vm1, %v112_v53, 0.0  ;;  %v114_v1 = vld [vmem:[#allocation5 + $0x48] sm:$0xff]  ;;  %v217_v3 = vsel %vm121_vm1, %v191_v57, 0.0  ;;  %v137_v4 = vsel %vm121_vm1, %v113_v59, 0.0  ;;  %v193_v5 = vld [vmem:[#allocation8 + $0x68] sm:$0xff] }
  0x1f   :  { %v204_v34 = vadd.f32 %v203_v23, %v202_v24  ;;  %v128_v48 = vadd.f32 %v127_v38, %v126_v42  ;;  %v115_v7 = vld [vmem:[#allocation5 + $0x50] sm:$0xff]  ;;  %v219_v9 = vsel %vm121_vm1, %v192_v63, 0.0  ;;  %v139_v10 = vsel %vm121_vm1, %v114_v1, 0.0  ;;  %v194_v11 = vld [vmem:[#allocation8 + $0x70] sm:$0xff]  ;;  %v116_v13 = vld [vmem:[#allocation5 + $0x58] sm:$0xff]  ;;  %s533_s25 = smov [#allocation11]  }
  0x20   :  { %v221_v15 = vsel %vm121_vm1, %v193_v5, 0.0  ;;  %v141_v16 = vsel %vm121_vm1, %v115_v7, 0.0  ;;  %v195_v17 = vld [vmem:[#allocation8 + $0x78] sm:$0xff]  ;;  %v117_v19 = vld [vmem:[#allocation5 + $0x60] sm:$0xff]  ;;  %v223_v21 = vsel %vm121_vm1, %v194_v11, 0.0  ;;  %v143_v22 = vsel %vm121_vm1, %v116_v13, 0.0 }
  0x21   :  { %v206_v40 = vadd.f32 %v205_v28, %v204_v34  ;;  %v130_v54 = vadd.f32 %v129_v44, %v128_v48  ;;  %v118_v24 = vld [vmem:[#allocation5 + $0x68] sm:$0xff]  ;;  %v225_v26 = vsel %vm121_vm1, %v195_v17, 0.0  ;;  %v145_v27 = vsel %vm121_vm1, %v117_v19, 0.0  ;;  %v119_v29 = vld [vmem:[#allocation5 + $0x70] sm:$0xff]  ;;  %v120_v33 = vld [vmem:[#allocation5 + $0x78] sm:$0xff]  ;;  %s254_s26 = sshll.u32 %s533_s25, 4  ;;  %s255_s26 = int_to_ptr.vmem [resolvable:$true] %s254_s26 }
  0x22   :  { %v147_v31 = vsel %vm121_vm1, %v118_v24, 0.0  ;;  %v149_v35 = vsel %vm121_vm1, %v119_v29, 0.0  ;;  %vm103_vm2 = vcmask 0   ;;  %s256_s29 = sshll.u32 %s641_s5, 4  ;;  %s534_s30 = smov [#allocation13]   ;;  %s257_s29 = int_to_ptr.hbm [resolvable:$true] %s256_s29 }
  0x23   :  { %v208_v46 = vadd.f32 %v207_v37, %v206_v40  ;;  %v132_v60 = vadd.f32 %v131_v50, %v130_v54  ;;  %v151_v37 = vsel %vm121_vm1, %v120_v33, 0.0  ;;  %s265_s8 = sshll.u32 %s534_s30, 4  ;;  %s267_s10 = sshll.u32 %s642_s6, 4  ;;  %s266_s8 = int_to_ptr.vmem [resolvable:$true] %s265_s8  ;;  %s268_s10 = int_to_ptr.hbm [resolvable:$true] %s267_s10 }
  0x24   :  { %s278_s13 = sshll.u32 %s643_s7, 4  ;;  %s535_s14 = smov [#allocation14]   ;;  %s279_s13 = int_to_ptr.hbm [resolvable:$true] %s278_s13 }
  0x25   :  { %v210_v52 = vadd.f32 %v209_v43, %v208_v46  ;;  %v134_v2 = vadd.f32 %v133_v56, %v132_v60  ;;  %s276_s15 = sshll.u32 %s535_s14, 4  ;;  %s277_s15 = int_to_ptr.vmem [resolvable:$true] %s276_s15 }
  0x27   :  { %v212_v58 = vadd.f32 %v211_v49, %v210_v52  ;;  %v136_v8 = vadd.f32 %v135_v62, %v134_v2 }
  0x29   :  { %v214_v0 = vadd.f32 %v213_v55, %v212_v58  ;;  %v138_v14 = vadd.f32 %v137_v4, %v136_v8 }
  0x2b   :  { %v216_v6 = vadd.f32 %v215_v61, %v214_v0  ;;  %v140_v20 = vadd.f32 %v139_v10, %v138_v14 }
  0x2d   :  { %v218_v12 = vadd.f32 %v217_v3, %v216_v6  ;;  %v142_v25 = vadd.f32 %v141_v16, %v140_v20 }
  0x2f   :  { %v220_v18 = vadd.f32 %v219_v9, %v218_v12  ;;  %v144_v30 = vadd.f32 %v143_v22, %v142_v25 }
  0x31   :  { %v222_v23 = vadd.f32 %v221_v15, %v220_v18  ;;  %v146_v34 = vadd.f32 %v145_v27, %v144_v30 }
  0x33   :  { %v224_v28 = vadd.f32 %v223_v21, %v222_v23  ;;  %v148_v36 = vadd.f32 %v147_v31, %v146_v34 }
  0x35   :  { %v226_v32 = vadd.f32 %v225_v26, %v224_v28  ;;  %v150_v38 = vadd.f32 %v149_v35, %v148_v36 }
  0x37   :  { %227 = vadd.xlane.f32.xlu1 %v226_v32  ;;  %v152_v39 = vadd.f32 %v151_v37, %v150_v38 }
  0x39   :  { %153 = vadd.xlane.f32.xlu0 %v152_v39 }
  0x8c   :  { %v94_v40 = vpop.xlane.xlu0 %93 }
  0x8d   :  { %v95_v41 = vrot.slane %v94_v40, 4  ;;  %v170_v47 = vpop.xlane.xlu1 %169 }
  0x8e   :  { %v171_v48 = vrot.slane %v170_v47, 4 }
  0x8f   :  { %v96_v42 = vadd.f32 %v95_v41, %v94_v40 }
  0x90   :  { %v172_v51 = vadd.f32 %v171_v48, %v170_v47 }
  0x91   :  { %v97_v43 = vrot.slane %v96_v42, 2 }
  0x92   :  { %v173_v54 = vrot.slane %v172_v51, 2 }
  0x93   :  { %v98_v44 = vadd.f32 %v97_v43, %v96_v42 }
  0x94   :  { %v174_v59 = vadd.f32 %v173_v54, %v172_v51 }
  0x95   :  { %v99_v45 = vrot.slane %v98_v44, 1 }
  0x96   :  { %v175_v63 = vrot.slane %v174_v59, 1 }
  0x97   :  { %v100_v46 = vadd.f32 %v99_v45, %v98_v44 }
  0x98   :  { %v176_v3 = vadd.f32 %v175_v63, %v174_v59 }
  0x99   :  { %304 = vpush %v100_v46 }
  0xaa   :  { %v228_v49 = vpop.xlane.xlu1 %227 }
  0xab   :  { %v229_v50 = vrot.slane %v228_v49, 4 }
  0xac   :  { %v154_v55 = vpop.xlane.xlu0 %153 }
  0xad   :  { %v230_v52 = vadd.f32 %v229_v50, %v228_v49  ;;  %v155_v56 = vrot.slane %v154_v55, 4 }
  0xaf   :  { %v231_v53 = vrot.slane %v230_v52, 2  ;;  %v156_v58 = vadd.f32 %v155_v56, %v154_v55 }
  0xb1   :  { %v232_v57 = vadd.f32 %v231_v53, %v230_v52  ;;  %v157_v60 = vrot.slane %v156_v58, 2 }
  0xb3   :  { %v158_v61 = vadd.f32 %v157_v60, %v156_v58  ;;  %v233_v62 = vrot.slane %v232_v57, 1 }
  0xb5   :  { %v159_v0 = vrot.slane %v158_v61, 1  ;;  %v234_v2 = vadd.f32 %v233_v62, %v232_v57 }
  0xb7   :  { %v160_v1 = vadd.f32 %v159_v0, %v158_v61 }
  0xb9   :  { %306 = vpush %v160_v1 }
  0xba   :  { %308 = vpush %v176_v3 }
  0xbb   :  { %310 = vpush %v234_v2 }
  0xca   :  { %s305_s24 = spop %304 }
  0xcb   :  { %v102_v4 = vstv %s305_s24 }
  0xcc   :  { %104 = vst.msk [vmem:[#allocation10] sm:$0x1] %vm103_vm2, %v102_v4 }
  0xcd   :  { %248 = dma.vmem_to_hbm [thread:$0]  %s244_s23, 16, %s246_s21, [#allocation4]  }
  0xea   :  { %s307_s1 = spop %306 }
  0xeb   :  { %v162_v5 = vstv %s307_s1  ;;  %s309_s16 = spop %308 }
  0xec   :  { %163 = vst.msk [vmem:[#allocation11] sm:$0x1] %vm103_vm2, %v162_v5  ;;  %v178_v6 = vstv %s309_s16  ;;  %s311_s5 = spop %310 }
  0xed   :  { %179 = vst.msk [vmem:[#allocation13] sm:$0x1] %vm103_vm2, %v178_v6  ;;  %v236_v7 = vstv %s311_s5  ;;  %259 = dma.vmem_to_hbm [thread:$0]  %s255_s26, 16, %s257_s29, [#allocation12]  }
  0xee   :  { %237 = vst.msk [vmem:[#allocation14] sm:$0x1] %vm103_vm2, %v236_v7  ;;  %270 = dma.vmem_to_hbm [thread:$0]  %s266_s8, 16, %s268_s10, [#allocation12]  }
  0xef   :  { %281 = dma.vmem_to_hbm [thread:$0]  %s277_s15, 16, %s279_s13, [#allocation15]  }
  0xf0   :  { %520 = dma.done.wait [#allocation4], 16  }
  0xf1   :  { %521 = vsyncadd [#allocation4], 4294967280 }
  0xf2   :  { %522 = dma.done.wait [#allocation12], 32  }
  0xf3   :  { %523 = vsyncadd [#allocation12], 4294967264 }
  0xf4   :  { %524 = dma.done.wait [#allocation15], 16  }
  0xf5   :  { %525 = vsyncadd [#allocation15], 4294967280 }
  0xf6   :  { %298 = vsyncpa [#allocation3], 1 }
  0xf7   :  { %299 = vsyncpa [#allocation6], 1 }
  0xf8   :  { %300 = vsyncpa [#allocation9], 1 }
  0xf9   :  { %301 = vsyncpa [#allocation4], 1 }
  0xfa   :  { %302 = vsyncpa [#allocation12], 1 }
  0xfb   :  { %303 = vsyncpa [#allocation15], 1 }

</bundles_post_ra>
